<compile_context>
chip_gen: v7x
topology: tpu7x:2x2x1
jax: 0.10.0
libtpu: 0.0.40
codegen_flags: <defaults>
</compile_context>

<pallas_src>
import math

import jax
import jax.numpy as jnp
import numpy as np
from jax.experimental import pallas as pl
from jax.experimental.pallas import tpu as pltpu

TWO_PI = 2.0 * math.pi
EPS = 1e-8
# From the module __init__: hsv_min = [0, 0, 0], hsv_max = [2*pi, 0.02, 0.02].
HSV_MIN = (0.0, 0.0, 0.0)
HSV_MAX = (TWO_PI, 0.02, 0.02)

# Guard the dead-code assumptions baked into the kernel mask (the hue test is
# dropped; the saturation test uses a divide-free rewrite).  If these constants
# ever become runtime parameters with different values, fail loudly instead of
# silently producing wrong masks.
assert HSV_MIN == (0.0, 0.0, 0.0) and HSV_MAX[0] >= TWO_PI, (
    "kernel mask assumes hsv_min=[0,0,0] and a hue range covering [0, 2*pi]")


def _background_kernel(idx_ref, img_ref, bg_ref, out_ref):
    # idx_ref (scalar prefetch) is only consumed by the bg BlockSpec index_map.
    del idx_ref

    r = img_ref[:, 0]  # (TB, TH, W)
    g = img_ref[:, 1]
    b = img_ref[:, 2]

    maxc = jnp.maximum(jnp.maximum(r, g), b)   # == V channel of HSV
    minc = jnp.minimum(jnp.minimum(r, g), b)
    delta = maxc - minc

    # Background mask.  With the fixed constants above the hue test is always
    # true (h in [0, 2*pi]), so
    #   mask = (0 <= v <= 0.02) & (s <= 0.02)
    # and s <= 0.02  <=>  delta <= 0.02 * (v + eps)  (divide-free rewrite;
    # valid because v >= 0 is enforced by the V-range check; exactly-borderline
    # pixels may round differently from the explicit-divide reference).
    mask = jnp.logical_and(
        jnp.logical_and(maxc >= HSV_MIN[2], maxc <= HSV_MAX[2]),
        delta <= HSV_MAX[1] * (maxc + EPS),
    )

    # mask is boolean, so a select equals img*(1-mask) + bg*mask exactly.  The
    # single (1, TH, W) background block broadcasts over the TB packed images.
    out_ref[:, 0] = jnp.where(mask, bg_ref[0, 0], r)
    out_ref[:, 1] = jnp.where(mask, bg_ref[0, 1], g)
    out_ref[:, 2] = jnp.where(mask, bg_ref[0, 2], b)


def _tuning_params():
    """(target block bytes, vmem_limit_bytes) from the local TPU generation."""
    vmem_cap = None
    try:
        vmem_cap = getattr(pltpu.get_tpu_info(), "vmem_capacity_bytes", None)
    except Exception:
        pass
    if vmem_cap is not None and vmem_cap > (96 << 20):
        # v5e / v6e (128 MiB VMEM): ~8 MiB blocks -> ~97% of HBM roofline on
        # v6e, free on v5e's budget; 6 double-buffered blocks = 48 MiB < 64.
        return 8 << 20, 64 << 20
    # v7x (64 MiB/TC) or unknown: ~5 MiB blocks keep the per-step overhead
    # <10% of the ~1.6 us DMA at 3.2 TB/s; footprint <= 30 MiB < 48 MiB cap.
    return 5 << 20, 48 << 20


def _choose_tiles(N, C, H, W, itemsize, target_bytes):
    """Pick (TB, TH) so one (TB, C, TH, W) block is ~target_bytes.

    Small frames: whole image per step, pack TB images per block (amortizes
    the ~0.35 us per-grid-step overhead).  Large frames: one image per step,
    TH a multiple of 8; the last H tile may be ragged.
    """
    row_bytes = C * W * itemsize          # one pixel row across all channels
    slab_bytes = row_bytes * H            # one full image
    if H <= 8 or slab_bytes <= target_bytes:
        th = H
        tb = max(1, min(N, target_bytes // max(slab_bytes, 1)))
    else:
        tb = 1
        th = min(H, max(8, (target_bytes // row_bytes) // 8 * 8))
    return int(tb), int(th)


def _make_call(out_shape, grid, tb, th, C, W, vmem_limit, cost, bg_buffer_count):
    img_spec = pl.BlockSpec((tb, C, th, W), lambda h, n, idx_ref: (n, 0, h, 0))
    out_spec = pl.BlockSpec((tb, C, th, W), lambda h, n, idx_ref: (n, 0, h, 0))
    bg_kwargs = {}
    if bg_buffer_count is not None:
        bg_kwargs["pipeline_mode"] = pl.Buffered(bg_buffer_count)
    # The bg index_map ignores the (inner) batch index, so the block stays
    # resident across all batch steps of an H tile; it is indexed by the
    # scalar-prefetched random background id.
    bg_spec = pl.BlockSpec((1, C, th, W),
                           lambda h, n, idx_ref: (idx_ref[0], 0, h, 0),
                           **bg_kwargs)
    return pl.pallas_call(
        _background_kernel,
        out_shape=out_shape,
        grid_spec=pltpu.PrefetchScalarGridSpec(
            num_scalar_prefetch=1,
            grid=grid,
            in_specs=[img_spec, bg_spec],
            out_specs=out_spec,
        ),
        compiler_params=pltpu.CompilerParams(
            dimension_semantics=("parallel", "parallel"),
            vmem_limit_bytes=vmem_limit,
        ),
        cost_estimate=cost,
    )


def random_real_life_background(img, bg_bank, idx, *, tile_rows=None,
                                tile_batch=None):
    """img: (N, 3, H, W) f32, bg_bank: (K, 3, H, W) f32, idx: (1,) int32."""
    N, C, H, W = img.shape
    assert C == 3, "RGB input expected"
    assert bg_bank.shape[1:] == (C, H, W), "bg bank must match the image size"
    # TODO(synk): for production widths pad W to a multiple of 128 in the
    # wrapper to keep lane-dense (unmasked) stores; full-W blocks are legal
    # either way.
    # TODO(synk): bf16 I/O would halve the (purely HBM-bound) traffic -- the
    # only remaining ~2x lever -- kept f32 to match the PyTorch module dtype.

    target_bytes, vmem_limit = _tuning_params()
    tb, th = _choose_tiles(N, C, H, W, img.dtype.itemsize, target_bytes)
    if tile_rows is not None:
        th = min(int(tile_rows), H)
    if tile_batch is not None:
        tb = min(int(tile_batch), N)
    assert th == H or th % 8 == 0, "tile_rows must be a multiple of 8 or == H"

    n_h, n_b = pl.cdiv(H, th), pl.cdiv(N, tb)
    # v7x has two TensorCores: make sure the "parallel" grid has >= 2 steps so
    # the work can be split (no effect on single-TC v5e/v6e).
    while n_h * n_b < 2:
        if tb > 1:
            tb = max(1, tb // 2)
        elif th > 8 and H > 8:
            th = max(8, (th // 2) // 8 * 8)
        else:
            break
        n_h, n_b = pl.cdiv(H, th), pl.cdiv(N, tb)
    grid = (n_h, n_b)

    # Advisory hint: clearly mem-bound (img + bg read, out written; ~15 VPU
    # ops per pixel, no transcendentals).
    itemsize = img.dtype.itemsize
    cost = pl.CostEstimate(
        flops=15 * N * H * W,
        transcendentals=0,
        bytes_accessed=(2 * N + 1) * C * H * W * itemsize,
    )
    out_shape = jax.ShapeDtypeStruct((N, C, H, W), img.dtype)

    try:
        # Single-buffer the bg operand: its block index changes only once per
        # H tile, so double-buffering it just burns one block of VMEM.
        call = _make_call(out_shape, grid, tb, th, C, W, vmem_limit, cost,
                          bg_buffer_count=1)
        return call(idx, img, bg_bank)
    except Exception:
        # TODO(synk): pl.Buffered(1) rejected by this JAX version; fall back to
        # the default double buffering (same semantics, one extra bg block).
        call = _make_call(out_shape, grid, tb, th, C, W, vmem_limit, cost,
                          bg_buffer_count=None)
        return call(idx, img, bg_bank)


def _reference(img, bg):
    """Pure-JAX reference with the FULL HSV computation (kornia semantics)."""
    r, g, b = img[:, 0], img[:, 1], img[:, 2]
    maxc = jnp.maximum(jnp.maximum(r, g), b)
    minc = jnp.minimum(jnp.minimum(r, g), b)
    delta = maxc - minc
    v = maxc
    s = delta / (maxc + EPS)
    delta_safe = jnp.where(delta == 0.0, 1.0, delta)
    h1 = g - b
    h2 = (b - r) + 2.0 * delta
    h3 = (r - g) + 4.0 * delta
    is_r = r == maxc
    is_g = jnp.logical_and(g == maxc, ~is_r)
    h = jnp.where(is_r, h1, jnp.where(is_g, h2, h3))
    h = TWO_PI * ((h / delta_safe / 6.0) % 1.0)
    mask = ((h >= HSV_MIN[0]) & (h <= HSV_MAX[0]) &
            (s >= HSV_MIN[1]) & (s <= HSV_MAX[1]) &
            (v >= HSV_MIN[2]) & (v <= HSV_MAX[2])).astype(jnp.float32)
    mask = mask[:, None]  # keepdim over channel
    return img * (1.0 - mask) + bg[None] * mask


if __name__ == "__main__":
    key = jax.random.PRNGKey(0)
    k_img, k_hole, k_bank, k_idx = jax.random.split(key, 4)

    N, C, H, W = 2, 3, 32, 128
    K = 4  # number of "real-life background" images in the synthetic bank

    # Foreground image with some (near-)black background pixels.
    img = jax.random.uniform(k_img, (N, C, H, W), dtype=jnp.float32,
                             minval=0.1, maxval=1.0)
    hole = (jax.random.uniform(k_hole, (N, 1, H, W)) < 0.4).astype(jnp.float32)
    img = img * (1.0 - hole)  # zero out ~40% of pixels -> black background

    # TODO(synk): the real module decodes background images from file paths and
    # resizes them; here the bank is a synthetic tensor at the target size.
    bg_bank = jax.random.uniform(k_bank, (K, C, H, W), dtype=jnp.float32)

    # torch.randint(0, len(backgrounds), (1,)) equivalent (host-side RNG).
    idx = jax.random.randint(k_idx, (1,), 0, K, dtype=jnp.int32)

    ref = _reference(img, bg_bank[idx[0]])

    # 1) Auto-tuned tiling (generation-aware block target, >= 2 grid steps).
    out = jax.block_until_ready(random_real_life_background(img, bg_bank, idx))
    np.testing.assert_allclose(np.asarray(out), np.asarray(ref),
                               rtol=1e-5, atol=1e-5)

    # 2) Forced small tiles: exercises the ragged last H tile (32 = 24 + 8),
    #    batch packing (TB=2) and the bg-block broadcast inside the kernel.
    out2 = jax.block_until_ready(
        random_real_life_background(img, bg_bank, idx,
                                    tile_rows=24, tile_batch=2))
    np.testing.assert_allclose(np.asarray(out2), np.asarray(ref),
                               rtol=1e-5, atol=1e-5)

    print("KERNEL_OK")
</pallas_src>

<mosaic_0001>
module attributes {stable_mosaic.version = 11 : i64} {
  func.func @_background_kernel(%arg0: i32, %arg1: i32, %arg2: memref<1xi32, #tpu.memory_space<smem>>, %arg3: memref<1x3x32x128xf32, #tpu.memory_space<vmem>>, %arg4: memref<1x3x32x128xf32, #tpu.memory_space<vmem>>, %arg5: memref<1x3x32x128xf32, #tpu.memory_space<vmem>>) attributes {dimension_semantics = [#tpu.dimension_semantics<parallel>, #tpu.dimension_semantics<parallel>], iteration_bounds = array<i64: 1, 2>, scalar_prefetch = 1 : i64, scratch_operands = 0 : i64, tpu.core_type = #tpu.core_type<tc>, window_params = [{transform_indices = @transform_0, window_bounds = array<i64: 1, 3, 32, 128>}, {pipeline_mode = #tpu.pipeline_mode<synchronous>, transform_indices = @transform_1, window_bounds = array<i64: 1, 3, 32, 128>}, {transform_indices = @transform_2, window_bounds = array<i64: 1, 3, 32, 128>}]} {
    %c0 = arith.constant 0 : index
    %c0_0 = arith.constant 0 : index
    %c0_1 = arith.constant 0 : index
    %c0_2 = arith.constant 0 : index
    %0 = vector.load %arg3[%c0, %c0_0, %c0_1, %c0_2] : memref<1x3x32x128xf32, #tpu.memory_space<vmem>>, vector<1x1x32x128xf32>
    %1 = vector.shape_cast %0 : vector<1x1x32x128xf32> to vector<1x32x128xf32>
    %c0_3 = arith.constant 0 : index
    %c1 = arith.constant 1 : index
    %c0_4 = arith.constant 0 : index
    %c0_5 = arith.constant 0 : index
    %2 = vector.load %arg3[%c0_3, %c1, %c0_4, %c0_5] : memref<1x3x32x128xf32, #tpu.memory_space<vmem>>, vector<1x1x32x128xf32>
    %3 = vector.shape_cast %2 : vector<1x1x32x128xf32> to vector<1x32x128xf32>
    %c0_6 = arith.constant 0 : index
    %c2 = arith.constant 2 : index
    %c0_7 = arith.constant 0 : index
    %c0_8 = arith.constant 0 : index
    %4 = vector.load %arg3[%c0_6, %c2, %c0_7, %c0_8] : memref<1x3x32x128xf32, #tpu.memory_space<vmem>>, vector<1x1x32x128xf32>
    %5 = vector.shape_cast %4 : vector<1x1x32x128xf32> to vector<1x32x128xf32>
    %6 = arith.maximumf %1, %3 : vector<1x32x128xf32>
    %7 = arith.maximumf %6, %5 : vector<1x32x128xf32>
    %8 = arith.minimumf %1, %3 : vector<1x32x128xf32>
    %9 = arith.minimumf %8, %5 : vector<1x32x128xf32>
    %10 = arith.subf %7, %9 : vector<1x32x128xf32>
    %cst = arith.constant 0.000000e+00 : f32
    %11 = vector.broadcast %cst : f32 to vector<1x32x128xf32>
    %12 = arith.cmpf oge, %7, %11 : vector<1x32x128xf32>
    %cst_9 = arith.constant 2.000000e-02 : f32
    %13 = vector.broadcast %cst_9 : f32 to vector<1x32x128xf32>
    %14 = arith.cmpf ole, %7, %13 : vector<1x32x128xf32>
    %15 = arith.andi %12, %14 : vector<1x32x128xi1>
    %cst_10 = arith.constant 9.99999993E-9 : f32
    %16 = vector.broadcast %cst_10 : f32 to vector<1x32x128xf32>
    %17 = arith.addf %7, %16 : vector<1x32x128xf32>
    %cst_11 = arith.constant 2.000000e-02 : f32
    %18 = vector.broadcast %cst_11 : f32 to vector<1x32x128xf32>
    %19 = arith.mulf %18, %17 : vector<1x32x128xf32>
    %20 = arith.cmpf ole, %10, %19 : vector<1x32x128xf32>
    %21 = arith.andi %15, %20 : vector<1x32x128xi1>
    %c0_12 = arith.constant 0 : index
    %c0_13 = arith.constant 0 : index
    %c0_14 = arith.constant 0 : index
    %c0_15 = arith.constant 0 : index
    %22 = vector.load %arg4[%c0_12, %c0_13, %c0_14, %c0_15] : memref<1x3x32x128xf32, #tpu.memory_space<vmem>>, vector<1x1x32x128xf32>
    %23 = vector.shape_cast %22 : vector<1x1x32x128xf32> to vector<32x128xf32>
    %24 = vector.shape_cast %23 : vector<32x128xf32> to vector<1x32x128xf32>
    %25 = arith.select %21, %24, %1 : vector<1x32x128xi1>, vector<1x32x128xf32>
    %c0_16 = arith.constant 0 : index
    %c0_17 = arith.constant 0 : index
    %c0_18 = arith.constant 0 : index
    %c0_19 = arith.constant 0 : index
    %26 = vector.load %arg5[%c0_16, %c0_17, %c0_18, %c0_19] : memref<1x3x32x128xf32, #tpu.memory_space<vmem>>, vector<1x1x32x128xf32>
    %27 = vector.shape_cast %26 : vector<1x1x32x128xf32> to vector<1x32x128xf32>
    %28 = vector.shape_cast %25 : vector<1x32x128xf32> to vector<1x1x32x128xf32>
    tpu.vector_store %arg5[%c0_16, %c0_17, %c0_18, %c0_19], %28 {strides = array<i32>} : memref<1x3x32x128xf32, #tpu.memory_space<vmem>>, vector<1x1x32x128xf32>,
    %c0_20 = arith.constant 0 : index
    %c1_21 = arith.constant 1 : index
    %c0_22 = arith.constant 0 : index
    %c0_23 = arith.constant 0 : index
    %29 = vector.load %arg4[%c0_20, %c1_21, %c0_22, %c0_23] : memref<1x3x32x128xf32, #tpu.memory_space<vmem>>, vector<1x1x32x128xf32>
    %30 = vector.shape_cast %29 : vector<1x1x32x128xf32> to vector<32x128xf32>
    %31 = vector.shape_cast %30 : vector<32x128xf32> to vector<1x32x128xf32>
    %32 = arith.select %21, %31, %3 : vector<1x32x128xi1>, vector<1x32x128xf32>
    %c0_24 = arith.constant 0 : index
    %c1_25 = arith.constant 1 : index
    %c0_26 = arith.constant 0 : index
    %c0_27 = arith.constant 0 : index
    %33 = vector.load %arg5[%c0_24, %c1_25, %c0_26, %c0_27] : memref<1x3x32x128xf32, #tpu.memory_space<vmem>>, vector<1x1x32x128xf32>
    %34 = vector.shape_cast %33 : vector<1x1x32x128xf32> to vector<1x32x128xf32>
    %35 = vector.shape_cast %32 : vector<1x32x128xf32> to vector<1x1x32x128xf32>
    tpu.vector_store %arg5[%c0_24, %c1_25, %c0_26, %c0_27], %35 {strides = array<i32>} : memref<1x3x32x128xf32, #tpu.memory_space<vmem>>, vector<1x1x32x128xf32>,
    %c0_28 = arith.constant 0 : index
    %c2_29 = arith.constant 2 : index
    %c0_30 = arith.constant 0 : index
    %c0_31 = arith.constant 0 : index
    %36 = vector.load %arg4[%c0_28, %c2_29, %c0_30, %c0_31] : memref<1x3x32x128xf32, #tpu.memory_space<vmem>>, vector<1x1x32x128xf32>
    %37 = vector.shape_cast %36 : vector<1x1x32x128xf32> to vector<32x128xf32>
    %38 = vector.shape_cast %37 : vector<32x128xf32> to vector<1x32x128xf32>
    %39 = arith.select %21, %38, %5 : vector<1x32x128xi1>, vector<1x32x128xf32>
    %c0_32 = arith.constant 0 : index
    %c2_33 = arith.constant 2 : index
    %c0_34 = arith.constant 0 : index
    %c0_35 = arith.constant 0 : index
    %40 = vector.load %arg5[%c0_32, %c2_33, %c0_34, %c0_35] : memref<1x3x32x128xf32, #tpu.memory_space<vmem>>, vector<1x1x32x128xf32>
    %41 = vector.shape_cast %40 : vector<1x1x32x128xf32> to vector<1x32x128xf32>
    %42 = vector.shape_cast %39 : vector<1x32x128xf32> to vector<1x1x32x128xf32>
    tpu.vector_store %arg5[%c0_32, %c2_33, %c0_34, %c0_35], %42 {strides = array<i32>} : memref<1x3x32x128xf32, #tpu.memory_space<vmem>>, vector<1x1x32x128xf32>,
    return
  }
  func.func @transform_0(%arg0: i32, %arg1: i32, %arg2: memref<1xi32, #tpu.memory_space<smem>>) -> (i32, i32, i32, i32) {
    %c0_i32 = arith.constant 0 : i32
    %c0_i32_0 = arith.constant 0 : i32
    %c0_i32_1 = arith.constant 0 : i32
    return %arg1, %c0_i32, %arg0, %c0_i32_0 : i32, i32, i32, i32
  }
  func.func @transform_1(%arg0: i32, %arg1: i32, %arg2: memref<1xi32, #tpu.memory_space<smem>>) -> (i32, i32, i32, i32) {
    %c0 = arith.constant 0 : index
    %0 = memref.load %arg2[%c0] : memref<1xi32, #tpu.memory_space<smem>>
    %c0_i32 = arith.constant 0 : i32
    %c0_i32_0 = arith.constant 0 : i32
    %c0_i32_1 = arith.constant 0 : i32
    return %0, %c0_i32, %arg0, %c0_i32_0 : i32, i32, i32, i32
  }
  func.func @transform_2(%arg0: i32, %arg1: i32, %arg2: memref<1xi32, #tpu.memory_space<smem>>) -> (i32, i32, i32, i32) {
    %c0_i32 = arith.constant 0 : i32
    %c0_i32_0 = arith.constant 0 : i32
    %c0_i32_1 = arith.constant 0 : i32
    return %arg1, %c0_i32, %arg0, %c0_i32_0 : i32, i32, i32, i32
  }
}

module attributes {stable_mosaic.version = 11 : i64} {
  func.func @_background_kernel(%arg0: i32, %arg1: i32, %arg2: memref<1xi32, #tpu.memory_space<smem>>, %arg3: memref<1x3x32x128xf32, #tpu.memory_space<vmem>>, %arg4: memref<1x3x32x128xf32, #tpu.memory_space<vmem>>, %arg5: memref<1x3x32x128xf32, #tpu.memory_space<vmem>>) attributes {dimension_semantics = [#tpu.dimension_semantics<parallel>, #tpu.dimension_semantics<parallel>], iteration_bounds = array<i64: 1, 2>, scalar_prefetch = 1 : i64, scratch_operands = 0 : i64, tpu.core_type = #tpu.core_type<tc>, window_params = [{transform_indices = @transform_0, window_bounds = array<i64: 1, 3, 32, 128>}, {transform_indices = @transform_1, window_bounds = array<i64: 1, 3, 32, 128>}, {transform_indices = @transform_2, window_bounds = array<i64: 1, 3, 32, 128>}]} {
    %c0 = arith.constant 0 : index
    %c0_0 = arith.constant 0 : index
    %c0_1 = arith.constant 0 : index
    %c0_2 = arith.constant 0 : index
    %0 = vector.load %arg3[%c0, %c0_0, %c0_1, %c0_2] : memref<1x3x32x128xf32, #tpu.memory_space<vmem>>, vector<1x1x32x128xf32>
    %1 = vector.shape_cast %0 : vector<1x1x32x128xf32> to vector<1x32x128xf32>
    %c0_3 = arith.constant 0 : index
    %c1 = arith.constant 1 : index
    %c0_4 = arith.constant 0 : index
    %c0_5 = arith.constant 0 : index
    %2 = vector.load %arg3[%c0_3, %c1, %c0_4, %c0_5] : memref<1x3x32x128xf32, #tpu.memory_space<vmem>>, vector<1x1x32x128xf32>
    %3 = vector.shape_cast %2 : vector<1x1x32x128xf32> to vector<1x32x128xf32>
    %c0_6 = arith.constant 0 : index
    %c2 = arith.constant 2 : index
    %c0_7 = arith.constant 0 : index
    %c0_8 = arith.constant 0 : index
    %4 = vector.load %arg3[%c0_6, %c2, %c0_7, %c0_8] : memref<1x3x32x128xf32, #tpu.memory_space<vmem>>, vector<1x1x32x128xf32>
    %5 = vector.shape_cast %4 : vector<1x1x32x128xf32> to vector<1x32x128xf32>
    %6 = arith.maximumf %1, %3 : vector<1x32x128xf32>
    %7 = arith.maximumf %6, %5 : vector<1x32x128xf32>
    %8 = arith.minimumf %1, %3 : vector<1x32x128xf32>
    %9 = arith.minimumf %8, %5 : vector<1x32x128xf32>
    %10 = arith.subf %7, %9 : vector<1x32x128xf32>
    %cst = arith.constant 0.000000e+00 : f32
    %11 = vector.broadcast %cst : f32 to vector<1x32x128xf32>
    %12 = arith.cmpf oge, %7, %11 : vector<1x32x128xf32>
    %cst_9 = arith.constant 2.000000e-02 : f32
    %13 = vector.broadcast %cst_9 : f32 to vector<1x32x128xf32>
    %14 = arith.cmpf ole, %7, %13 : vector<1x32x128xf32>
    %15 = arith.andi %12, %14 : vector<1x32x128xi1>
    %cst_10 = arith.constant 9.99999993E-9 : f32
    %16 = vector.broadcast %cst_10 : f32 to vector<1x32x128xf32>
    %17 = arith.addf %7, %16 : vector<1x32x128xf32>
    %cst_11 = arith.constant 2.000000e-02 : f32
    %18 = vector.broadcast %cst_11 : f32 to vector<1x32x128xf32>
    %19 = arith.mulf %18, %17 : vector<1x32x128xf32>
    %20 = arith.cmpf ole, %10, %19 : vector<1x32x128xf32>
    %21 = arith.andi %15, %20 : vector<1x32x128xi1>
    %c0_12 = arith.constant 0 : index
    %c0_13 = arith.constant 0 : index
    %c0_14 = arith.constant 0 : index
    %c0_15 = arith.constant 0 : index
    %22 = vector.load %arg4[%c0_12, %c0_13, %c0_14, %c0_15] : memref<1x3x32x128xf32, #tpu.memory_space<vmem>>, vector<1x1x32x128xf32>
    %23 = vector.shape_cast %22 : vector<1x1x32x128xf32> to vector<32x128xf32>
    %24 = vector.shape_cast %23 : vector<32x128xf32> to vector<1x32x128xf32>
    %25 = arith.select %21, %24, %1 : vector<1x32x128xi1>, vector<1x32x128xf32>
    %c0_16 = arith.constant 0 : index
    %c0_17 = arith.constant 0 : index
    %c0_18 = arith.constant 0 : index
    %c0_19 = arith.constant 0 : index
    %26 = vector.load %arg5[%c0_16, %c0_17, %c0_18, %c0_19] : memref<1x3x32x128xf32, #tpu.memory_space<vmem>>, vector<1x1x32x128xf32>
    %27 = vector.shape_cast %26 : vector<1x1x32x128xf32> to vector<1x32x128xf32>
    %28 = vector.shape_cast %25 : vector<1x32x128xf32> to vector<1x1x32x128xf32>
    tpu.vector_store %arg5[%c0_16, %c0_17, %c0_18, %c0_19], %28 {strides = array<i32>} : memref<1x3x32x128xf32, #tpu.memory_space<vmem>>, vector<1x1x32x128xf32>,
    %c0_20 = arith.constant 0 : index
    %c1_21 = arith.constant 1 : index
    %c0_22 = arith.constant 0 : index
    %c0_23 = arith.constant 0 : index
    %29 = vector.load %arg4[%c0_20, %c1_21, %c0_22, %c0_23] : memref<1x3x32x128xf32, #tpu.memory_space<vmem>>, vector<1x1x32x128xf32>
    %30 = vector.shape_cast %29 : vector<1x1x32x128xf32> to vector<32x128xf32>
    %31 = vector.shape_cast %30 : vector<32x128xf32> to vector<1x32x128xf32>
    %32 = arith.select %21, %31, %3 : vector<1x32x128xi1>, vector<1x32x128xf32>
    %c0_24 = arith.constant 0 : index
    %c1_25 = arith.constant 1 : index
    %c0_26 = arith.constant 0 : index
    %c0_27 = arith.constant 0 : index
    %33 = vector.load %arg5[%c0_24, %c1_25, %c0_26, %c0_27] : memref<1x3x32x128xf32, #tpu.memory_space<vmem>>, vector<1x1x32x128xf32>
    %34 = vector.shape_cast %33 : vector<1x1x32x128xf32> to vector<1x32x128xf32>
    %35 = vector.shape_cast %32 : vector<1x32x128xf32> to vector<1x1x32x128xf32>
    tpu.vector_store %arg5[%c0_24, %c1_25, %c0_26, %c0_27], %35 {strides = array<i32>} : memref<1x3x32x128xf32, #tpu.memory_space<vmem>>, vector<1x1x32x128xf32>,
    %c0_28 = arith.constant 0 : index
    %c2_29 = arith.constant 2 : index
    %c0_30 = arith.constant 0 : index
    %c0_31 = arith.constant 0 : index
    %36 = vector.load %arg4[%c0_28, %c2_29, %c0_30, %c0_31] : memref<1x3x32x128xf32, #tpu.memory_space<vmem>>, vector<1x1x32x128xf32>
    %37 = vector.shape_cast %36 : vector<1x1x32x128xf32> to vector<32x128xf32>
    %38 = vector.shape_cast %37 : vector<32x128xf32> to vector<1x32x128xf32>
    %39 = arith.select %21, %38, %5 : vector<1x32x128xi1>, vector<1x32x128xf32>
    %c0_32 = arith.constant 0 : index
    %c2_33 = arith.constant 2 : index
    %c0_34 = arith.constant 0 : index
    %c0_35 = arith.constant 0 : index
    %40 = vector.load %arg5[%c0_32, %c2_33, %c0_34, %c0_35] : memref<1x3x32x128xf32, #tpu.memory_space<vmem>>, vector<1x1x32x128xf32>
    %41 = vector.shape_cast %40 : vector<1x1x32x128xf32> to vector<1x32x128xf32>
    %42 = vector.shape_cast %39 : vector<1x32x128xf32> to vector<1x1x32x128xf32>
    tpu.vector_store %arg5[%c0_32, %c2_33, %c0_34, %c0_35], %42 {strides = array<i32>} : memref<1x3x32x128xf32, #tpu.memory_space<vmem>>, vector<1x1x32x128xf32>,
    return
  }
  func.func @transform_0(%arg0: i32, %arg1: i32, %arg2: memref<1xi32, #tpu.memory_space<smem>>) -> (i32, i32, i32, i32) {
    %c0_i32 = arith.constant 0 : i32
    %c0_i32_0 = arith.constant 0 : i32
    %c0_i32_1 = arith.constant 0 : i32
    return %arg1, %c0_i32, %arg0, %c0_i32_0 : i32, i32, i32, i32
  }
  func.func @transform_1(%arg0: i32, %arg1: i32, %arg2: memref<1xi32, #tpu.memory_space<smem>>) -> (i32, i32, i32, i32) {
    %c0 = arith.constant 0 : index
    %0 = memref.load %arg2[%c0] : memref<1xi32, #tpu.memory_space<smem>>
    %c0_i32 = arith.constant 0 : i32
    %c0_i32_0 = arith.constant 0 : i32
    %c0_i32_1 = arith.constant 0 : i32
    return %0, %c0_i32, %arg0, %c0_i32_0 : i32, i32, i32, i32
  }
  func.func @transform_2(%arg0: i32, %arg1: i32, %arg2: memref<1xi32, #tpu.memory_space<smem>>) -> (i32, i32, i32, i32) {
    %c0_i32 = arith.constant 0 : i32
    %c0_i32_0 = arith.constant 0 : i32
    %c0_i32_1 = arith.constant 0 : i32
    return %arg1, %c0_i32, %arg0, %c0_i32_0 : i32, i32, i32, i32
  }
}

</mosaic_0001>

<bundles_post_ra>
// kernel: tpu_custom_call.1
= control target key start
LH: loop header
LB: loop body
LE: loop exit
PB: predicated region body
PF: predicated region fallthrough
CT: control target
= control target key end

     0   :  { %s1139_s0 = inlined_call_operand.<no memory space> [shape: s32[1], index: 0, kind: input, shape index: {}]   ;;  %s1140_s1 = inlined_call_operand.hbm [shape: f32[2,3,32,128], index: 1, kind: input, shape index: {}]   ;;  %s1141_s2 = inlined_call_operand.hbm [shape: f32[4,3,32,128], index: 2, kind: input, shape index: {}]   ;;  %s1142_s3 = inlined_call_operand.hbm [shape: f32[2,3,32,128], index: 3, kind: output, shape index: {}]  }
   0x1   :  { %8 = sst [smem:[#allocation3]] %s1139_s0 }
   0x2   :  { %9 = vsyncpa [#allocation5], 0 }
   0x3   :  { %11 = vsyncpa [#allocation5 + $0x1], 0 }
   0x4   :  { %12 = vsyncpa [#allocation8], 0 }
   0x5   :  { %13 = vsyncpa [#allocation6], 0 }
   0x6   :  { %15 = vsyncpa [#allocation6 + $0x1], 0  ;;  %s762_s14 = smov 0   ;;  %s764_s15 = smov 0  }
   0x7   :  { %s766_s16 = smov 0   ;;  %s768_s17 = smov 0  }
   0x8   :  { %s770_s18 = smov 0   ;;  %s772_s19 = smov 0  }
   0x9   :  { %s774_s20 = smov 0   ;;  %s776_s0 = smov 0  }
   0xa LB: > { %s436_s21 = sadd.s32 4294967295, %s730_s0   ;;  %s437_s22 = sadd.s32 4294967294, %s730_s0   ;;  %s730_s0 = sphi %s776_s0, %s21_s0   ;;  %s726_s20 = sphi %s774_s20, %s1178_s20   ;;  %s722_s19 = sphi %s772_s19, %s1177_s19   ;;  %s718_s18 = sphi %s770_s18, %s1176_s18   ;;  %s714_s17 = sphi %s768_s17, %s1175_s17   ;;  %s710_s16 = sphi %s766_s16, %s1174_s16   ;;  %s706_s15 = sphi %s764_s15, %s1120_s15   ;;  %s702_s14 = sphi %s762_s14, %s1173_s14  }
   0xb   : > { %p55_p0 = scmp.ne.s32.totalorder %s714_s17, %s710_s16  ;;  %p56_p1 = scmp.eq.s32.totalorder %s436_s21, 0 }
   0xc   : > { %s65_s23 = sld [smem:[#allocation3]]  ;;  %p85_p3 = scmp.ne.s32.totalorder %s706_s15, %s702_s14 }
   0xd   : > { %p804_p2 = por %p56_p1, %p55_p0  ;;  %p809_p4 = scmp.eq.s32.totalorder %s436_s21, 1 }
   0xe   : > { %p117_p5 = scmp.eq.s32.totalorder %s437_s22, 1  ;;  %p813_p6 = por %p85_p3, %p56_p1 }
   0xf   : > { %s1147_s24 = scalar_select %p804_p2, 1, 0 }
  0x10   : > { %s1148_s25 = scalar_select %p809_p4, 1, 0 }
  0x11   : > { %s1149_s26 = scalar_select %p813_p6, 1, 0 }
  0x12   : > { %p438_p7 = scmp.ge.s32.totalorder %s730_s0, 1  ;;  %p818_p8 = por %p117_p5, %p55_p0 }
  0x13   : > { %p124_p9 = scmp.lt.s32.totalorder %s730_s0, 3  ;;  %s462_s29 = smul.u32 1536, %s65_s23 }
  0x14   : > { %s1150_s27 = scalar_select %p818_p8, 1, 0 }
  0x15   : > { %p823_p10 = pnand %p438_p7, %p124_p9  ;;  %s732_s30 = smov [#allocation7]  }
  0x16   : > { %s142_s4 = sshll.u32 %s732_s30, 4  ;;  %s832_s7 = scalar_lea.hbm %s1141_s2, %s462_s29  ;;  %s834_s4 = int_to_ptr.vmem [resolvable:$true] %s142_s4 }
  0x17   : > { %s1151_s28 = scalar_select %p823_p10, 1, 0 }
  0x18   : > { %p473_p11 = pneg %p823_p10  ;;  %s564_s9 = scalar_lea.hbm %s832_s7, 1536 }
  0x19   : > { %p565_p0 = scmp.ne.s32.totalorder %s832_s7, %s564_s9  ;;  %s569_s12 = scalar_lea.hbm %s1141_s2, 6144 }
  0x1a   : > { %p838_p12 = pnand %p473_p11, %p813_p6  ;;  %p570_p7 = scmp.lt.u32.totalorder %s832_s7, %s1141_s2 }
  0x1b   : > { %p571_p9 = scmp.lt.u32.totalorder %s569_s12, %s564_s9  ;;  %p573_p8 = scmp.lt.u32.totalorder %s564_s9, %s832_s7 }
  0x1c   : > { %p566_p1 = pneg %p838_p12 }
  0x1d   : > { %p572_p11 = por %p571_p9, %p570_p7 }
  0x1e   : > { %p567_p3 = pnand %p566_p1, %p565_p0 }
  0x1f   : > { %p574_p13 = por %p573_p8, %p572_p11 }
  0x20   : > { %p568_p5 = pneg %p567_p3 }
  0x22   : > { %p575_p6 = pnand %p574_p13, %p568_p5 }
  0x24   : > { %578 = shalt.err (!%p575_p6)
}
  0x25   : > { %s579_s21 = scalar_lea.vmem %s834_s4, 1536  ;;  %p587_p10 = scmp.lt.s32.totalorder %s834_s4, %s834_s4 }
  0x26   : > { %p580_p0 = scmp.ne.s32.totalorder %s834_s4, %s579_s21  ;;  %p588_p4 = scmp.lt.s32.totalorder %s579_s21, %s579_s21 }
  0x28   : > { %p582_p3 = pnand %p580_p0, %p566_p1  ;;  %p589_p7 = por %p588_p4, %p587_p10 }
  0x2a   : > { %p583_p2 = pneg %p582_p3 }
  0x2c   : > { %p590_p9 = pnand %p589_p7, %p583_p2 }
  0x2e   : > { %593 = shalt.err (!%p590_p9)
}
  0x2f   : > { %s733_s22 = smov 128   ;;  %s734_s23 = smov 8  }
  0x30   : > { %476 = dma.hbm_to_vmem [thread:$0]  (!%p838_p12), %s832_s7, 1536, %s834_s4, [#allocation8], %s733_s22, %s733_s22, %s734_s23  }
  0x31   : > { %s30_s29 = sadd.s32 1, %s726_s20  ;;  %s42_s30 = sadd.s32 1, %s718_s18 }
  0x32   : > { %p31_p2 = scmp.ge.s32.totalorder %s30_s29, 2  ;;  %p49_p4 = scmp.ne.s32.totalorder %s718_s18, %s714_s17 }
  0x33   : > { %p50_p6 = scmp.eq.s32.totalorder %s730_s0, 0  ;;  %p485_p8 = scmp.lt.s32.totalorder %s730_s0, 2 }
  0x34   : > { %s1180_s29 = smov (%p31_p2, %s30_s29), 0  ;;  %p1153_p13 = scmp.ne.s32.totalorder %s1148_s25, 0 }
  0x35   : > { %p51_p10 = por %p50_p6, %p49_p4  ;;  %s37_s6 = ssub.s32 %s726_s20, %s1180_s29 }
  0x36   : > { %p882_p1 = por %p1153_p13, %p49_p4  ;;  %s156_s8 = sand.u32 1, %s718_s18  }
  0x37   : > { %p40_p5 = scmp.eq.s32.totalorder %s37_s6, 0  ;;  %s463_s4 = smul.u32 96, %s156_s8 }
  0x38   : > { %p889_p12 = pnand %p485_p8, %p51_p10  ;;  %s464_s10 = smul.u32 1536, %s726_s20 }
  0x39   : > { %s894_s9 = scalar_select %p40_p5, %s718_s18, %s42_s30  }
  0x3a   : > { %s160_s11 = scalar_lea.vmem [#allocation4], %s463_s4  ;;  %s900_s14 = scalar_lea.hbm %s1140_s1, %s464_s10 }
  0x3b   : > { %s169_s12 = sshll.u32 %s160_s11, 4  ;;  %s904_s21 = scalar_lea.sflag [#allocation5], %s156_s8  ;;  %s902_s12 = int_to_ptr.vmem [resolvable:$true] %s169_s12 }
  0x3c   : > { %s594_s6 = scalar_lea.hbm %s900_s14, 1536  ;;  %p596_p0 = pneg %p889_p12 }
  0x3d   : > { %p595_p11 = scmp.ne.s32.totalorder %s900_s14, %s594_s6  ;;  %s599_s10 = scalar_lea.hbm %s1140_s1, 3072 }
  0x3e   : > { %p600_p9 = scmp.lt.u32.totalorder %s900_s14, %s1140_s1  ;;  %p601_p2 = scmp.lt.u32.totalorder %s599_s10, %s594_s6 }
  0x3f   : > { %p597_p3 = pnand %p596_p0, %p595_p11  ;;  %p603_p6 = scmp.lt.u32.totalorder %s594_s6, %s900_s14 }
  0x40   : > { %p602_p4 = por %p601_p2, %p600_p9 }
  0x41   : > { %p598_p7 = pneg %p597_p3 }
  0x42   : > { %p604_p8 = por %p603_p6, %p602_p4 }
  0x44   : > { %p605_p10 = pnand %p604_p8, %p598_p7 }
  0x46   : > { %608 = shalt.err (!%p605_p10)
}
  0x47   : > { %s609_s8 = scalar_lea.vmem %s902_s12, 1536  ;;  %s735_s13 = smov [#allocation4]  }
  0x48   : > { %p610_p13 = scmp.ne.s32.totalorder %s902_s12, %s609_s8  ;;  %s614_s30 = sshll.u32 %s735_s13, 4  ;;  %s615_s30 = int_to_ptr.vmem [resolvable:$false] %s614_s30 }
  0x49   : > { %s616_s4 = scalar_lea.vmem %s615_s30, 3072  ;;  %p617_p3 = scmp.lt.s32.totalorder %s902_s12, %s615_s30 }
  0x4a   : > { %p612_p5 = pnand %p610_p13, %p596_p0  ;;  %p618_p9 = scmp.lt.s32.totalorder %s616_s4, %s609_s8 }
  0x4c   : > { %p613_p11 = pneg %p612_p5  ;;  %p619_p2 = por %p618_p9, %p617_p3 }
  0x4e   : > { %p620_p4 = pnand %p619_p2, %p613_p11 }
  0x50   : > { %623 = shalt.err (!%p620_p4)
}
  0x51   : > { %480 = dma.hbm_to_vmem [thread:$0]  (!%p889_p12), %s900_s14, 1536, %s902_s12, %s904_s21, %s733_s22, %s733_s22, %s734_s23  }
  0x52   : > { %p1156_p0 = scmp.ne.s32.totalorder %s1151_s28, 0 }
  0x53   : > { %s938_s6 = sand.u32 (!%p1156_p0), 1, %s714_s17   ;;  %p1157_p7 = scmp.ne.s32.totalorder (!%p1156_p0), %s1147_s24, 0 }
  0x54   : > { %181 = sbr.rel (%p1156_p0) target bundleno = 132 (0x84), region = 28  ;;  %s184_s11 = scalar_lea.sflag (!%p1156_p0), [#allocation5], %s938_s6 }
  0x55   : > { %s465_s10 = smul.u32 (!%p1156_p0), 96, %s938_s6 }
  0x57   : > { %s944_s7 = scalar_lea.vmem (!%p1156_p0), [#allocation4], %s465_s10 }
  0x5b   : > { %689 = dma.done.wait (%p1157_p7), %s184_s11, 1536  }
  0x5c   : > { %691 = vsyncadd (%p1157_p7), %s184_s11, 4294965760  ;;  %p1158_p12 = scmp.ne.s32.totalorder %s1149_s26, 0 }
  0x5e   : > { %693 = dma.done.wait (%p1158_p12), [#allocation8], 1536  }
  0x5f   : > { %695 = vsyncadd (%p1158_p12), [#allocation8], 4294965760  ;;  %v216_v0 = vld [vmem:[%s944_s7] sm:$0xff]  ;;  %v217_v5 = vld [vmem:[%s944_s7 + $0x8] sm:$0xff]  ;;  %s1036_s24 = scalar_lea.vmem [#allocation9], %s465_s10  ;;  %s466_s26 = smul.u32 1536, %s722_s19 }
  0x60   : > { %v956_v1 = vld [vmem:[%s944_s7 + $0x20] sm:$0xff]  ;;  %v965_v6 = vld [vmem:[%s944_s7 + $0x28] sm:$0xff]  ;;  %v973_v10 = vld [vmem:[%s944_s7 + $0x10] sm:$0xff]  ;;  %s334_s28 = sshll.u32 %s1036_s24, 4  ;;  %s319_s12 = scalar_lea.sflag [#allocation6], %s938_s6  ;;  %s1072_s28 = int_to_ptr.vmem [resolvable:$true] %s334_s28 }
  0x61   : > { %v959_v2 = vld [vmem:[%s944_s7 + $0x40] sm:$0xff]  ;;  %v230_v3 = vmax.f32 %v216_v0, %v956_v1  ;;  %v238_v4 = vmin.f32 %v216_v0, %v956_v1  ;;  %v968_v7 = vld [vmem:[%s944_s7 + $0x48] sm:$0xff]  ;;  %v231_v8 = vmax.f32 %v217_v5, %v965_v6  ;;  %v239_v9 = vmin.f32 %v217_v5, %v965_v6  ;;  %v978_v13 = vld [vmem:[%s944_s7 + $0x30] sm:$0xff]  ;;  %s1079_s23 = scalar_lea.hbm %s1142_s3, %s466_s26  ;;  %s624_s14 = scalar_lea.vmem %s1072_s28, 1536 }
  0x62   : > { %v983_v16 = vld [vmem:[%s944_s7 + $0x50] sm:$0xff]  ;;  %v232_v17 = vmax.f32 %v973_v10, %v978_v13  ;;  %v240_v18 = vmin.f32 %v973_v10, %v978_v13  ;;  %v990_v19 = vld [vmem:[%s944_s7 + $0x18] sm:$0xff]  ;;  %v278_v27 = vld [vmem:[#allocation7] sm:$0xff]  ;;  %p625_p6 = scmp.ne.s32.totalorder %s1072_s28, %s624_s14  ;;  %s736_s21 = smov [#allocation9]  }
  0x63   : > { %v234_v11 = vmax.f32 %v230_v3, %v959_v2  ;;  %v242_v12 = vmin.f32 %v238_v4, %v959_v2  ;;  %v235_v14 = vmax.f32 %v231_v8, %v968_v7  ;;  %v243_v15 = vmin.f32 %v239_v9, %v968_v7  ;;  %v993_v20 = vld [vmem:[%s944_s7 + $0x38] sm:$0xff]  ;;  %v291_v35 = vld [vmem:[#allocation7 + $0x20] sm:$0xff]  ;;  %v279_v37 = vld [vmem:[#allocation7 + $0x8] sm:$0xff]  ;;  %s628_s25 = sshll.u32 %s736_s21, 4  ;;  %s629_s25 = int_to_ptr.vmem [resolvable:$false] %s628_s25 }
  0x64   : > { %v236_v28 = vmax.f32 %v232_v17, %v983_v16  ;;  %v244_v29 = vmin.f32 %v240_v18, %v983_v16  ;;  %v1002_v30 = vld [vmem:[%s944_s7 + $0x58] sm:$0xff]  ;;  %v233_v31 = vmax.f32 %v990_v19, %v993_v20  ;;  %v241_v34 = vmin.f32 %v990_v19, %v993_v20  ;;  %v305_v36 = vld [vmem:[#allocation7 + $0x40] sm:$0xff]  ;;  %v292_v43 = vld [vmem:[#allocation7 + $0x28] sm:$0xff]  ;;  %p626_p8 = pnand %p625_p6, %p882_p1  ;;  %s630_s8 = scalar_lea.vmem %s629_s25, 3072 }
  0x65   : > { %v246_v21 = vsub.f32 %v234_v11, %v242_v12  ;;  %vm250_vm0 = vcmp.ge.f32.partialorder %v234_v11, 0.0  ;;  %vm254_vm1 = vcmp.le.f32.partialorder %v234_v11, 0.02  ;;  %v262_v22 = vadd.f32 1e-08, %v234_v11  ;;  %v306_v44 = vld [vmem:[#allocation7 + $0x48] sm:$0xff]  ;;  %p631_p13 = scmp.lt.s32.totalorder %s1072_s28, %s629_s25  ;;  %p632_p5 = scmp.lt.s32.totalorder %s630_s8, %s624_s14 }
  0x66   : > { %v247_v23 = vsub.f32 %v235_v14, %v243_v15  ;;  %vm251_vm2 = vcmp.ge.f32.partialorder %v235_v14, 0.0  ;;  %vm255_vm3 = vcmp.le.f32.partialorder %v235_v14, 0.02  ;;  %v263_v24 = vadd.f32 1e-08, %v235_v14  ;;  %vm995_vm4 = vmand %vm250_vm0, %vm254_vm1  ;;  %v280_v52 = vld [vmem:[#allocation7 + $0x10] sm:$0xff]  ;;  %p627_p10 = pneg %p626_p8 }
  0x67   : > { %v266_v26 = vmul.f32 0.02, %v262_v22  ;;  %vm1006_vm5 = vmand %vm251_vm2, %vm255_vm3  ;;  %v248_v38 = vsub.f32 %v236_v28, %v244_v29  ;;  %vm252_vm7 = vcmp.ge.f32.partialorder %v236_v28, 0.0  ;;  %vm256_vm8 = vcmp.le.f32.partialorder %v236_v28, 0.02  ;;  %v293_v56 = vld [vmem:[#allocation7 + $0x30] sm:$0xff]  ;;  %p633_p11 = por %p632_p5, %p631_p13 }
  0x68   : > { %v267_v33 = vmul.f32 0.02, %v263_v24  ;;  %v264_v40 = vadd.f32 1e-08, %v236_v28  ;;  %v237_v41 = vmax.f32 %v233_v31, %v1002_v30  ;;  %v245_v42 = vmin.f32 %v241_v34, %v1002_v30  ;;  %vm1043_vm12 = vmand %vm252_vm7, %vm256_vm8  ;;  %v307_v58 = vld [vmem:[#allocation7 + $0x50] sm:$0xff]  ;;  %v281_v62 = vld [vmem:[#allocation7 + $0x18] sm:$0xff] }
  0x69   : > { %vm270_vm6 = vcmp.le.f32.partialorder %v246_v21, %v266_v26  ;;  %p634_p3 = pnand %p633_p11, %p627_p10 }
  0x6a   : > { %vm1014_vm9 = vmand %vm995_vm4, %vm270_vm6  ;;  %vm271_vm10 = vcmp.le.f32.partialorder %v247_v23, %v267_v33  ;;  %v268_v51 = vmul.f32 0.02, %v264_v40  ;;  %v249_v53 = vsub.f32 %v237_v41, %v245_v42  ;;  %vm253_vm13 = vcmp.ge.f32.partialorder %v237_v41, 0.0 }
  0x6b   : > { %v282_v45 = vsel %vm1014_vm9, %v278_v27, %v216_v0  ;;  %vm1024_vm11 = vmand %vm1006_vm5, %vm271_vm10  ;;  %v295_v47 = vsel %vm1014_vm9, %v291_v35, %v956_v1  ;;  %v309_v48 = vsel %vm1014_vm9, %v305_v36, %v959_v2  ;;  %vm257_vm14 = vcmp.le.f32.partialorder %v237_v41, 0.02  ;;  %v294_v0 = vld [vmem:[#allocation7 + $0x38] sm:$0xff] }
  0x6c   : > { %286 = vst [vmem:[%s1036_s24] sm:$0xff] %v282_v45  ;;  %v283_v49 = vsel %vm1024_vm11, %v279_v37, %v217_v5  ;;  %451 = vst [vmem:[%s1036_s24 + $0x20] sm:$0xff] %v295_v47  ;;  %v265_v54 = vadd.f32 1e-08, %v237_v41  ;;  %v296_v55 = vsel %vm1024_vm11, %v292_v43, %v965_v6  ;;  %v310_v57 = vsel %vm1024_vm11, %v306_v44, %v968_v7  ;;  %v308_v2 = vld [vmem:[#allocation7 + $0x58] sm:$0xff] }
  0x6d   : > { %455 = vst [vmem:[%s1036_s24 + $0x40] sm:$0xff] %v309_v48  ;;  %287 = vst [vmem:[%s1036_s24 + $0x8] sm:$0xff] %v283_v49  ;;  %vm272_vm15 = vcmp.le.f32.partialorder %v248_v38, %v268_v51 }
  0x6e   : > { %vm1056_vm0 = vmand %vm253_vm13, %vm257_vm14  ;;  %452 = vst [vmem:[%s1036_s24 + $0x28] sm:$0xff] %v296_v55  ;;  %v269_v60 = vmul.f32 0.02, %v265_v54 }
  0x6f   : > { %456 = vst [vmem:[%s1036_s24 + $0x48] sm:$0xff] %v310_v57  ;;  %vm276_vm1 = vmand %vm1043_vm12, %vm272_vm15 }
  0x70   : > { %v284_v61 = vsel %vm276_vm1, %v280_v52, %v973_v10  ;;  %v297_v63 = vsel %vm276_vm1, %v293_v56, %v978_v13  ;;  %v311_v1 = vsel %vm276_vm1, %v307_v58, %v983_v16  ;;  %vm273_vm2 = vcmp.le.f32.partialorder %v249_v53, %v269_v60 }
  0x71   : > { %288 = vst [vmem:[%s1036_s24 + $0x10] sm:$0xff] %v284_v61  ;;  %453 = vst [vmem:[%s1036_s24 + $0x30] sm:$0xff] %v297_v63 }
  0x72   : > { %457 = vst [vmem:[%s1036_s24 + $0x50] sm:$0xff] %v311_v1  ;;  %vm277_vm3 = vmand %vm1056_vm0, %vm273_vm2 }
  0x73   : > { %v285_v3 = vsel %vm277_vm3, %v281_v62, %v990_v19  ;;  %v298_v4 = vsel %vm277_vm3, %v294_v0, %v993_v20  ;;  %v312_v5 = vsel %vm277_vm3, %v308_v2, %v1002_v30 }
  0x74   : > { %289 = vst [vmem:[%s1036_s24 + $0x18] sm:$0xff] %v285_v3  ;;  %454 = vst [vmem:[%s1036_s24 + $0x38] sm:$0xff] %v298_v4 }
  0x75   : > { %458 = vst [vmem:[%s1036_s24 + $0x58] sm:$0xff] %v312_v5 }
  0x76   : > { %637 = shalt.err (!%p634_p3)
}
  0x77   : > { %s638_s13 = scalar_lea.hbm %s1079_s23, 1536  ;;  %s642_s10 = scalar_lea.hbm %s1142_s3, 3072 }
  0x78   : > { %p639_p9 = scmp.ne.s32.totalorder %s1079_s23, %s638_s13  ;;  %p643_p0 = scmp.lt.u32.totalorder %s1079_s23, %s1142_s3 }
  0x79   : > { %p644_p7 = scmp.lt.u32.totalorder %s642_s10, %s638_s13  ;;  %p646_p6 = scmp.lt.u32.totalorder %s638_s13, %s1079_s23 }
  0x7a   : > { %p640_p2 = pnand %p639_p9, %p882_p1 }
  0x7b   : > { %p645_p12 = por %p644_p7, %p643_p0 }
  0x7c   : > { %p641_p4 = pneg %p640_p2 }
  0x7d   : > { %p647_p8 = por %p646_p6, %p645_p12 }
  0x7f   : > { %p648_p10 = pnand %p647_p8, %p641_p4 }
  0x81   : > { %651 = shalt.err (!%p648_p10)
}
  0x82   : > { %s737_s24 = smov 128   ;;  %s738_s26 = smov 8  }
  0x83   : > { %471 = dma.vmem_to_hbm [thread:$0]  (%p882_p1), %s1072_s28, 1536, %s1079_s23, %s319_s12, %s737_s24, %s737_s24, %s738_s26  }
  0x84 PF: > { %s349_s19 = sand.u32 1, %s710_s16   ;;  %p1171_p13 = scmp.ne.s32.totalorder %s1150_s27, 0 }
  0x85   : > { %p1172_p5 = scmp.ge.s32.totalorder %s730_s0, 2  ;;  %s350_s22 = scalar_lea.sflag [#allocation6], %s349_s19 }
  0x87   : > { %p482_p11 = pnand %p1172_p5, %p1171_p13 }
  0x89   : > { %697 = dma.done.wait (!%p482_p11), %s350_s22, 1536  }
  0x8a   : > { %699 = vsyncadd (!%p482_p11), %s350_s22, 4294965760  ;;  %s21_s0 = sadd.s32 1, %s730_s0   ;;  %s1173_s14 = smov %s706_s15 }
  0x8b   : > { %p18_p3 = scmp.ge.s32.totalorder %s21_s0, 4   ;;  %s1120_s15 = smov 0  }
  0x8c   : > { %s1174_s16 = smov %s714_s17  ;;  %s1175_s17 = smov %s718_s18 }
  0x8d   : > { %s1176_s18 = smov %s894_s9  ;;  %s1177_s19 = smov %s726_s20 }
  0x8e   : > { %s1178_s20 = smov %s1180_s29  ;;  %20 = sbr.rel (!%p18_p3) target bundleno = 10 (0xa), region = 84 }
  0x95   :  { %355 = vsyncpa [#allocation5], 1 }
  0x96   :  { %357 = vsyncpa [#allocation5 + $0x1], 1 }
  0x97   :  { %358 = vsyncpa [#allocation8], 1 }
  0x98   :  { %359 = vsyncpa [#allocation6], 1 }
  0x99   :  { %361 = vsyncpa [#allocation6 + $0x1], 1 }

// kernel: tpu_custom_call.1
= control target key start
LH: loop header
LB: loop body
LE: loop exit
PB: predicated region body
PF: predicated region fallthrough
CT: control target
= control target key end

     0   :  { %s1139_s0 = inlined_call_operand.<no memory space> [shape: s32[1], index: 0, kind: input, shape index: {}]   ;;  %s1140_s1 = inlined_call_operand.hbm [shape: f32[2,3,32,128], index: 1, kind: input, shape index: {}]   ;;  %s1141_s2 = inlined_call_operand.hbm [shape: f32[4,3,32,128], index: 2, kind: input, shape index: {}]   ;;  %s1142_s3 = inlined_call_operand.hbm [shape: f32[2,3,32,128], index: 3, kind: output, shape index: {}]  }
   0x1   :  { %8 = sst [smem:[#allocation3]] %s1139_s0 }
   0x2   :  { %9 = vsyncpa [#allocation5], 0 }
   0x3   :  { %11 = vsyncpa [#allocation5 + $0x1], 0 }
   0x4   :  { %12 = vsyncpa [#allocation8], 0 }
   0x5   :  { %13 = vsyncpa [#allocation6], 0 }
   0x6   :  { %15 = vsyncpa [#allocation6 + $0x1], 0  ;;  %s762_s14 = smov 0   ;;  %s764_s15 = smov 0  }
   0x7   :  { %s766_s16 = smov 0   ;;  %s768_s17 = smov 0  }
   0x8   :  { %s770_s18 = smov 0   ;;  %s772_s19 = smov 0  }
   0x9   :  { %s774_s20 = smov 0   ;;  %s776_s0 = smov 0  }
   0xa LB: > { %s436_s21 = sadd.s32 4294967295, %s730_s0   ;;  %s437_s22 = sadd.s32 4294967294, %s730_s0   ;;  %s730_s0 = sphi %s776_s0, %s21_s0   ;;  %s726_s20 = sphi %s774_s20, %s1178_s20   ;;  %s722_s19 = sphi %s772_s19, %s1177_s19   ;;  %s718_s18 = sphi %s770_s18, %s1176_s18   ;;  %s714_s17 = sphi %s768_s17, %s1175_s17   ;;  %s710_s16 = sphi %s766_s16, %s1174_s16   ;;  %s706_s15 = sphi %s764_s15, %s1120_s15   ;;  %s702_s14 = sphi %s762_s14, %s1173_s14  }
   0xb   : > { %p55_p0 = scmp.ne.s32.totalorder %s714_s17, %s710_s16  ;;  %p56_p1 = scmp.eq.s32.totalorder %s436_s21, 0 }
   0xc   : > { %s65_s23 = sld [smem:[#allocation3]]  ;;  %p85_p3 = scmp.ne.s32.totalorder %s706_s15, %s702_s14 }
   0xd   : > { %p804_p2 = por %p56_p1, %p55_p0  ;;  %p809_p4 = scmp.eq.s32.totalorder %s436_s21, 1 }
   0xe   : > { %p117_p5 = scmp.eq.s32.totalorder %s437_s22, 1  ;;  %p813_p6 = por %p85_p3, %p56_p1 }
   0xf   : > { %s1147_s24 = scalar_select %p804_p2, 1, 0 }
  0x10   : > { %s1148_s25 = scalar_select %p809_p4, 1, 0 }
  0x11   : > { %s1149_s26 = scalar_select %p813_p6, 1, 0 }
  0x12   : > { %p438_p7 = scmp.ge.s32.totalorder %s730_s0, 1  ;;  %p818_p8 = por %p117_p5, %p55_p0 }
  0x13   : > { %p124_p9 = scmp.lt.s32.totalorder %s730_s0, 3  ;;  %s462_s29 = smul.u32 1536, %s65_s23 }
  0x14   : > { %s1150_s27 = scalar_select %p818_p8, 1, 0 }
  0x15   : > { %p823_p10 = pnand %p438_p7, %p124_p9  ;;  %s732_s30 = smov [#allocation7]  }
  0x16   : > { %s142_s4 = sshll.u32 %s732_s30, 4  ;;  %s832_s7 = scalar_lea.hbm %s1141_s2, %s462_s29  ;;  %s834_s4 = int_to_ptr.vmem [resolvable:$true] %s142_s4 }
  0x17   : > { %s1151_s28 = scalar_select %p823_p10, 1, 0 }
  0x18   : > { %p473_p11 = pneg %p823_p10  ;;  %s564_s9 = scalar_lea.hbm %s832_s7, 1536 }
  0x19   : > { %p565_p0 = scmp.ne.s32.totalorder %s832_s7, %s564_s9  ;;  %s569_s12 = scalar_lea.hbm %s1141_s2, 6144 }
  0x1a   : > { %p838_p12 = pnand %p473_p11, %p813_p6  ;;  %p570_p7 = scmp.lt.u32.totalorder %s832_s7, %s1141_s2 }
  0x1b   : > { %p571_p9 = scmp.lt.u32.totalorder %s569_s12, %s564_s9  ;;  %p573_p8 = scmp.lt.u32.totalorder %s564_s9, %s832_s7 }
  0x1c   : > { %p566_p1 = pneg %p838_p12 }
  0x1d   : > { %p572_p11 = por %p571_p9, %p570_p7 }
  0x1e   : > { %p567_p3 = pnand %p566_p1, %p565_p0 }
  0x1f   : > { %p574_p13 = por %p573_p8, %p572_p11 }
  0x20   : > { %p568_p5 = pneg %p567_p3 }
  0x22   : > { %p575_p6 = pnand %p574_p13, %p568_p5 }
  0x24   : > { %578 = shalt.err (!%p575_p6)
}
  0x25   : > { %s579_s21 = scalar_lea.vmem %s834_s4, 1536  ;;  %p587_p10 = scmp.lt.s32.totalorder %s834_s4, %s834_s4 }
  0x26   : > { %p580_p0 = scmp.ne.s32.totalorder %s834_s4, %s579_s21  ;;  %p588_p4 = scmp.lt.s32.totalorder %s579_s21, %s579_s21 }
  0x28   : > { %p582_p3 = pnand %p580_p0, %p566_p1  ;;  %p589_p7 = por %p588_p4, %p587_p10 }
  0x2a   : > { %p583_p2 = pneg %p582_p3 }
  0x2c   : > { %p590_p9 = pnand %p589_p7, %p583_p2 }
  0x2e   : > { %593 = shalt.err (!%p590_p9)
}
  0x2f   : > { %s733_s22 = smov 128   ;;  %s734_s23 = smov 8  }
  0x30   : > { %476 = dma.hbm_to_vmem [thread:$0]  (!%p838_p12), %s832_s7, 1536, %s834_s4, [#allocation8], %s733_s22, %s733_s22, %s734_s23  }
  0x31   : > { %s30_s29 = sadd.s32 1, %s726_s20  ;;  %s42_s30 = sadd.s32 1, %s718_s18 }
  0x32   : > { %p31_p2 = scmp.ge.s32.totalorder %s30_s29, 2  ;;  %p49_p4 = scmp.ne.s32.totalorder %s718_s18, %s714_s17 }
  0x33   : > { %p50_p6 = scmp.eq.s32.totalorder %s730_s0, 0  ;;  %p485_p8 = scmp.lt.s32.totalorder %s730_s0, 2 }
  0x34   : > { %s1180_s29 = smov (%p31_p2, %s30_s29), 0  ;;  %p1153_p13 = scmp.ne.s32.totalorder %s1148_s25, 0 }
  0x35   : > { %p51_p10 = por %p50_p6, %p49_p4  ;;  %s37_s6 = ssub.s32 %s726_s20, %s1180_s29 }
  0x36   : > { %p882_p1 = por %p1153_p13, %p49_p4  ;;  %s156_s8 = sand.u32 1, %s718_s18  }
  0x37   : > { %p40_p5 = scmp.eq.s32.totalorder %s37_s6, 0  ;;  %s463_s4 = smul.u32 96, %s156_s8 }
  0x38   : > { %p889_p12 = pnand %p485_p8, %p51_p10  ;;  %s464_s10 = smul.u32 1536, %s726_s20 }
  0x39   : > { %s894_s9 = scalar_select %p40_p5, %s718_s18, %s42_s30  }
  0x3a   : > { %s160_s11 = scalar_lea.vmem [#allocation4], %s463_s4  ;;  %s900_s14 = scalar_lea.hbm %s1140_s1, %s464_s10 }
  0x3b   : > { %s169_s12 = sshll.u32 %s160_s11, 4  ;;  %s904_s21 = scalar_lea.sflag [#allocation5], %s156_s8  ;;  %s902_s12 = int_to_ptr.vmem [resolvable:$true] %s169_s12 }
  0x3c   : > { %s594_s6 = scalar_lea.hbm %s900_s14, 1536  ;;  %p596_p0 = pneg %p889_p12 }
  0x3d   : > { %p595_p11 = scmp.ne.s32.totalorder %s900_s14, %s594_s6  ;;  %s599_s10 = scalar_lea.hbm %s1140_s1, 3072 }
  0x3e   : > { %p600_p9 = scmp.lt.u32.totalorder %s900_s14, %s1140_s1  ;;  %p601_p2 = scmp.lt.u32.totalorder %s599_s10, %s594_s6 }
  0x3f   : > { %p597_p3 = pnand %p596_p0, %p595_p11  ;;  %p603_p6 = scmp.lt.u32.totalorder %s594_s6, %s900_s14 }
  0x40   : > { %p602_p4 = por %p601_p2, %p600_p9 }
  0x41   : > { %p598_p7 = pneg %p597_p3 }
  0x42   : > { %p604_p8 = por %p603_p6, %p602_p4 }
  0x44   : > { %p605_p10 = pnand %p604_p8, %p598_p7 }
  0x46   : > { %608 = shalt.err (!%p605_p10)
}
  0x47   : > { %s609_s8 = scalar_lea.vmem %s902_s12, 1536  ;;  %s735_s13 = smov [#allocation4]  }
  0x48   : > { %p610_p13 = scmp.ne.s32.totalorder %s902_s12, %s609_s8  ;;  %s614_s30 = sshll.u32 %s735_s13, 4  ;;  %s615_s30 = int_to_ptr.vmem [resolvable:$false] %s614_s30 }
  0x49   : > { %s616_s4 = scalar_lea.vmem %s615_s30, 3072  ;;  %p617_p3 = scmp.lt.s32.totalorder %s902_s12, %s615_s30 }
  0x4a   : > { %p612_p5 = pnand %p610_p13, %p596_p0  ;;  %p618_p9 = scmp.lt.s32.totalorder %s616_s4, %s609_s8 }
  0x4c   : > { %p613_p11 = pneg %p612_p5  ;;  %p619_p2 = por %p618_p9, %p617_p3 }
  0x4e   : > { %p620_p4 = pnand %p619_p2, %p613_p11 }
  0x50   : > { %623 = shalt.err (!%p620_p4)
}
  0x51   : > { %480 = dma.hbm_to_vmem [thread:$0]  (!%p889_p12), %s900_s14, 1536, %s902_s12, %s904_s21, %s733_s22, %s733_s22, %s734_s23  }
  0x52   : > { %p1156_p0 = scmp.ne.s32.totalorder %s1151_s28, 0 }
  0x53   : > { %s938_s6 = sand.u32 (!%p1156_p0), 1, %s714_s17   ;;  %p1157_p7 = scmp.ne.s32.totalorder (!%p1156_p0), %s1147_s24, 0 }
  0x54   : > { %181 = sbr.rel (%p1156_p0) target bundleno = 132 (0x84), region = 28  ;;  %s184_s11 = scalar_lea.sflag (!%p1156_p0), [#allocation5], %s938_s6 }
  0x55   : > { %s465_s10 = smul.u32 (!%p1156_p0), 96, %s938_s6 }
  0x57   : > { %s944_s7 = scalar_lea.vmem (!%p1156_p0), [#allocation4], %s465_s10 }
  0x5b   : > { %689 = dma.done.wait (%p1157_p7), %s184_s11, 1536  }
  0x5c   : > { %691 = vsyncadd (%p1157_p7), %s184_s11, 4294965760  ;;  %p1158_p12 = scmp.ne.s32.totalorder %s1149_s26, 0 }
  0x5e   : > { %693 = dma.done.wait (%p1158_p12), [#allocation8], 1536  }
  0x5f   : > { %695 = vsyncadd (%p1158_p12), [#allocation8], 4294965760  ;;  %v216_v0 = vld [vmem:[%s944_s7] sm:$0xff]  ;;  %v217_v5 = vld [vmem:[%s944_s7 + $0x8] sm:$0xff]  ;;  %s1036_s24 = scalar_lea.vmem [#allocation9], %s465_s10  ;;  %s466_s26 = smul.u32 1536, %s722_s19 }
  0x60   : > { %v956_v1 = vld [vmem:[%s944_s7 + $0x20] sm:$0xff]  ;;  %v965_v6 = vld [vmem:[%s944_s7 + $0x28] sm:$0xff]  ;;  %v973_v10 = vld [vmem:[%s944_s7 + $0x10] sm:$0xff]  ;;  %s334_s28 = sshll.u32 %s1036_s24, 4  ;;  %s319_s12 = scalar_lea.sflag [#allocation6], %s938_s6  ;;  %s1072_s28 = int_to_ptr.vmem [resolvable:$true] %s334_s28 }
  0x61   : > { %v959_v2 = vld [vmem:[%s944_s7 + $0x40] sm:$0xff]  ;;  %v230_v3 = vmax.f32 %v216_v0, %v956_v1  ;;  %v238_v4 = vmin.f32 %v216_v0, %v956_v1  ;;  %v968_v7 = vld [vmem:[%s944_s7 + $0x48] sm:$0xff]  ;;  %v231_v8 = vmax.f32 %v217_v5, %v965_v6  ;;  %v239_v9 = vmin.f32 %v217_v5, %v965_v6  ;;  %v978_v13 = vld [vmem:[%s944_s7 + $0x30] sm:$0xff]  ;;  %s1079_s23 = scalar_lea.hbm %s1142_s3, %s466_s26  ;;  %s624_s14 = scalar_lea.vmem %s1072_s28, 1536 }
  0x62   : > { %v983_v16 = vld [vmem:[%s944_s7 + $0x50] sm:$0xff]  ;;  %v232_v17 = vmax.f32 %v973_v10, %v978_v13  ;;  %v240_v18 = vmin.f32 %v973_v10, %v978_v13  ;;  %v990_v19 = vld [vmem:[%s944_s7 + $0x18] sm:$0xff]  ;;  %v278_v27 = vld [vmem:[#allocation7] sm:$0xff]  ;;  %p625_p6 = scmp.ne.s32.totalorder %s1072_s28, %s624_s14  ;;  %s736_s21 = smov [#allocation9]  }
  0x63   : > { %v234_v11 = vmax.f32 %v230_v3, %v959_v2  ;;  %v242_v12 = vmin.f32 %v238_v4, %v959_v2  ;;  %v235_v14 = vmax.f32 %v231_v8, %v968_v7  ;;  %v243_v15 = vmin.f32 %v239_v9, %v968_v7  ;;  %v993_v20 = vld [vmem:[%s944_s7 + $0x38] sm:$0xff]  ;;  %v291_v35 = vld [vmem:[#allocation7 + $0x20] sm:$0xff]  ;;  %v279_v37 = vld [vmem:[#allocation7 + $0x8] sm:$0xff]  ;;  %s628_s25 = sshll.u32 %s736_s21, 4  ;;  %s629_s25 = int_to_ptr.vmem [resolvable:$false] %s628_s25 }
  0x64   : > { %v236_v28 = vmax.f32 %v232_v17, %v983_v16  ;;  %v244_v29 = vmin.f32 %v240_v18, %v983_v16  ;;  %v1002_v30 = vld [vmem:[%s944_s7 + $0x58] sm:$0xff]  ;;  %v233_v31 = vmax.f32 %v990_v19, %v993_v20  ;;  %v241_v34 = vmin.f32 %v990_v19, %v993_v20  ;;  %v305_v36 = vld [vmem:[#allocation7 + $0x40] sm:$0xff]  ;;  %v292_v43 = vld [vmem:[#allocation7 + $0x28] sm:$0xff]  ;;  %p626_p8 = pnand %p625_p6, %p882_p1  ;;  %s630_s8 = scalar_lea.vmem %s629_s25, 3072 }
  0x65   : > { %v246_v21 = vsub.f32 %v234_v11, %v242_v12  ;;  %vm250_vm0 = vcmp.ge.f32.partialorder %v234_v11, 0.0  ;;  %vm254_vm1 = vcmp.le.f32.partialorder %v234_v11, 0.02  ;;  %v262_v22 = vadd.f32 1e-08, %v234_v11  ;;  %v306_v44 = vld [vmem:[#allocation7 + $0x48] sm:$0xff]  ;;  %p631_p13 = scmp.lt.s32.totalorder %s1072_s28, %s629_s25  ;;  %p632_p5 = scmp.lt.s32.totalorder %s630_s8, %s624_s14 }
  0x66   : > { %v247_v23 = vsub.f32 %v235_v14, %v243_v15  ;;  %vm251_vm2 = vcmp.ge.f32.partialorder %v235_v14, 0.0  ;;  %vm255_vm3 = vcmp.le.f32.partialorder %v235_v14, 0.02  ;;  %v263_v24 = vadd.f32 1e-08, %v235_v14  ;;  %vm995_vm4 = vmand %vm250_vm0, %vm254_vm1  ;;  %v280_v52 = vld [vmem:[#allocation7 + $0x10] sm:$0xff]  ;;  %p627_p10 = pneg %p626_p8 }
  0x67   : > { %v266_v26 = vmul.f32 0.02, %v262_v22  ;;  %vm1006_vm5 = vmand %vm251_vm2, %vm255_vm3  ;;  %v248_v38 = vsub.f32 %v236_v28, %v244_v29  ;;  %vm252_vm7 = vcmp.ge.f32.partialorder %v236_v28, 0.0  ;;  %vm256_vm8 = vcmp.le.f32.partialorder %v236_v28, 0.02  ;;  %v293_v56 = vld [vmem:[#allocation7 + $0x30] sm:$0xff]  ;;  %p633_p11 = por %p632_p5, %p631_p13 }
  0x68   : > { %v267_v33 = vmul.f32 0.02, %v263_v24  ;;  %v264_v40 = vadd.f32 1e-08, %v236_v28  ;;  %v237_v41 = vmax.f32 %v233_v31, %v1002_v30  ;;  %v245_v42 = vmin.f32 %v241_v34, %v1002_v30  ;;  %vm1043_vm12 = vmand %vm252_vm7, %vm256_vm8  ;;  %v307_v58 = vld [vmem:[#allocation7 + $0x50] sm:$0xff]  ;;  %v281_v62 = vld [vmem:[#allocation7 + $0x18] sm:$0xff] }
  0x69   : > { %vm270_vm6 = vcmp.le.f32.partialorder %v246_v21, %v266_v26  ;;  %p634_p3 = pnand %p633_p11, %p627_p10 }
  0x6a   : > { %vm1014_vm9 = vmand %vm995_vm4, %vm270_vm6  ;;  %vm271_vm10 = vcmp.le.f32.partialorder %v247_v23, %v267_v33  ;;  %v268_v51 = vmul.f32 0.02, %v264_v40  ;;  %v249_v53 = vsub.f32 %v237_v41, %v245_v42  ;;  %vm253_vm13 = vcmp.ge.f32.partialorder %v237_v41, 0.0 }
  0x6b   : > { %v282_v45 = vsel %vm1014_vm9, %v278_v27, %v216_v0  ;;  %vm1024_vm11 = vmand %vm1006_vm5, %vm271_vm10  ;;  %v295_v47 = vsel %vm1014_vm9, %v291_v35, %v956_v1  ;;  %v309_v48 = vsel %vm1014_vm9, %v305_v36, %v959_v2  ;;  %vm257_vm14 = vcmp.le.f32.partialorder %v237_v41, 0.02  ;;  %v294_v0 = vld [vmem:[#allocation7 + $0x38] sm:$0xff] }
  0x6c   : > { %286 = vst [vmem:[%s1036_s24] sm:$0xff] %v282_v45  ;;  %v283_v49 = vsel %vm1024_vm11, %v279_v37, %v217_v5  ;;  %451 = vst [vmem:[%s1036_s24 + $0x20] sm:$0xff] %v295_v47  ;;  %v265_v54 = vadd.f32 1e-08, %v237_v41  ;;  %v296_v55 = vsel %vm1024_vm11, %v292_v43, %v965_v6  ;;  %v310_v57 = vsel %vm1024_vm11, %v306_v44, %v968_v7  ;;  %v308_v2 = vld [vmem:[#allocation7 + $0x58] sm:$0xff] }
  0x6d   : > { %455 = vst [vmem:[%s1036_s24 + $0x40] sm:$0xff] %v309_v48  ;;  %287 = vst [vmem:[%s1036_s24 + $0x8] sm:$0xff] %v283_v49  ;;  %vm272_vm15 = vcmp.le.f32.partialorder %v248_v38, %v268_v51 }
  0x6e   : > { %vm1056_vm0 = vmand %vm253_vm13, %vm257_vm14  ;;  %452 = vst [vmem:[%s1036_s24 + $0x28] sm:$0xff] %v296_v55  ;;  %v269_v60 = vmul.f32 0.02, %v265_v54 }
  0x6f   : > { %456 = vst [vmem:[%s1036_s24 + $0x48] sm:$0xff] %v310_v57  ;;  %vm276_vm1 = vmand %vm1043_vm12, %vm272_vm15 }
  0x70   : > { %v284_v61 = vsel %vm276_vm1, %v280_v52, %v973_v10  ;;  %v297_v63 = vsel %vm276_vm1, %v293_v56, %v978_v13  ;;  %v311_v1 = vsel %vm276_vm1, %v307_v58, %v983_v16  ;;  %vm273_vm2 = vcmp.le.f32.partialorder %v249_v53, %v269_v60 }
  0x71   : > { %288 = vst [vmem:[%s1036_s24 + $0x10] sm:$0xff] %v284_v61  ;;  %453 = vst [vmem:[%s1036_s24 + $0x30] sm:$0xff] %v297_v63 }
  0x72   : > { %457 = vst [vmem:[%s1036_s24 + $0x50] sm:$0xff] %v311_v1  ;;  %vm277_vm3 = vmand %vm1056_vm0, %vm273_vm2 }
  0x73   : > { %v285_v3 = vsel %vm277_vm3, %v281_v62, %v990_v19  ;;  %v298_v4 = vsel %vm277_vm3, %v294_v0, %v993_v20  ;;  %v312_v5 = vsel %vm277_vm3, %v308_v2, %v1002_v30 }
  0x74   : > { %289 = vst [vmem:[%s1036_s24 + $0x18] sm:$0xff] %v285_v3  ;;  %454 = vst [vmem:[%s1036_s24 + $0x38] sm:$0xff] %v298_v4 }
  0x75   : > { %458 = vst [vmem:[%s1036_s24 + $0x58] sm:$0xff] %v312_v5 }
  0x76   : > { %637 = shalt.err (!%p634_p3)
}
  0x77   : > { %s638_s13 = scalar_lea.hbm %s1079_s23, 1536  ;;  %s642_s10 = scalar_lea.hbm %s1142_s3, 3072 }
  0x78   : > { %p639_p9 = scmp.ne.s32.totalorder %s1079_s23, %s638_s13  ;;  %p643_p0 = scmp.lt.u32.totalorder %s1079_s23, %s1142_s3 }
  0x79   : > { %p644_p7 = scmp.lt.u32.totalorder %s642_s10, %s638_s13  ;;  %p646_p6 = scmp.lt.u32.totalorder %s638_s13, %s1079_s23 }
  0x7a   : > { %p640_p2 = pnand %p639_p9, %p882_p1 }
  0x7b   : > { %p645_p12 = por %p644_p7, %p643_p0 }
  0x7c   : > { %p641_p4 = pneg %p640_p2 }
  0x7d   : > { %p647_p8 = por %p646_p6, %p645_p12 }
  0x7f   : > { %p648_p10 = pnand %p647_p8, %p641_p4 }
  0x81   : > { %651 = shalt.err (!%p648_p10)
}
  0x82   : > { %s737_s24 = smov 128   ;;  %s738_s26 = smov 8  }
  0x83   : > { %471 = dma.vmem_to_hbm [thread:$0]  (%p882_p1), %s1072_s28, 1536, %s1079_s23, %s319_s12, %s737_s24, %s737_s24, %s738_s26  }
  0x84 PF: > { %s349_s19 = sand.u32 1, %s710_s16   ;;  %p1171_p13 = scmp.ne.s32.totalorder %s1150_s27, 0 }
  0x85   : > { %p1172_p5 = scmp.ge.s32.totalorder %s730_s0, 2  ;;  %s350_s22 = scalar_lea.sflag [#allocation6], %s349_s19 }
  0x87   : > { %p482_p11 = pnand %p1172_p5, %p1171_p13 }
  0x89   : > { %697 = dma.done.wait (!%p482_p11), %s350_s22, 1536  }
  0x8a   : > { %699 = vsyncadd (!%p482_p11), %s350_s22, 4294965760  ;;  %s21_s0 = sadd.s32 1, %s730_s0   ;;  %s1173_s14 = smov %s706_s15 }
  0x8b   : > { %p18_p3 = scmp.ge.s32.totalorder %s21_s0, 4   ;;  %s1120_s15 = smov 0  }
  0x8c   : > { %s1174_s16 = smov %s714_s17  ;;  %s1175_s17 = smov %s718_s18 }
  0x8d   : > { %s1176_s18 = smov %s894_s9  ;;  %s1177_s19 = smov %s726_s20 }
  0x8e   : > { %s1178_s20 = smov %s1180_s29  ;;  %20 = sbr.rel (!%p18_p3) target bundleno = 10 (0xa), region = 84 }
  0x95   :  { %355 = vsyncpa [#allocation5], 1 }
  0x96   :  { %357 = vsyncpa [#allocation5 + $0x1], 1 }
  0x97   :  { %358 = vsyncpa [#allocation8], 1 }
  0x98   :  { %359 = vsyncpa [#allocation6], 1 }
  0x99   :  { %361 = vsyncpa [#allocation6 + $0x1], 1 }

</bundles_post_ra>
